<compile_context>
chip_gen: v5e
topology: v5e:2x2
jax: 0.10.0
libtpu: 0.0.40
codegen_flags: <defaults>
</compile_context>

<pallas_src>
import functools

import jax
import jax.numpy as jnp
from jax import lax
from jax.experimental import pallas as pl
from jax.experimental.pallas import tpu as pltpu

LANES = 128


def _loss_kernel(mask_ref, out_ref, gt_ref,
                 hole_ref, valid_ref, rel_ref,
                 *, rows, row_tile, needs_mask):
    m = mask_ref[...].astype(jnp.float32)
    o = out_ref[...].astype(jnp.float32)
    g = gt_ref[...].astype(jnp.float32)

    if needs_mask:
        # Last tile may extend past `rows`; zero out anything out-of-range.
        i = pl.program_id(0)
        row_ids = lax.broadcasted_iota(jnp.int32, m.shape, 0) + i * row_tile
        in_range = row_ids < rows
        zero = jnp.zeros_like(m)
        m = jnp.where(in_range, m, zero)
        o = jnp.where(in_range, o, zero)
        g = jnp.where(in_range, g, zero)

    d = o - g
    # l1_loss_hole  elements: |(1-m)*o - (1-m)*g| == |(1-m)*d|
    hole = jnp.abs((1.0 - m) * d)
    # l1_loss_valid elements: |m*o - m*g| == |m*d|
    valid = jnp.abs(m * d)
    # relative_loss elements: |exp(o)-exp(g)|/exp(g) == |exp(o-g) - 1|
    rel = jnp.abs(jnp.exp(d) - 1.0)

    def tile_partial(x):
        # (row_tile, 128) -> (8, 128) via vreg-wise adds (no cross-lane XLU).
        return x.reshape(row_tile // 8, 8, LANES).sum(axis=0)

    hole_ref[0] = tile_partial(hole)
    valid_ref[0] = tile_partial(valid)
    rel_ref[0] = tile_partial(rel)


def inpainting_loss(mask, output, gt, *, row_tile=2048):
    """JAX/Pallas equivalent of inpaintingtLoss.forward. Returns a dict of scalars."""
    assert mask.shape == output.shape == gt.shape
    n_elems = mask.size

    def _to_2d(x):
        x = jnp.asarray(x).reshape(-1)
        rem = x.size % LANES
        if rem:
            # Rare path (only when numel % 128 != 0); zero padding contributes 0
            # to all three sums (|exp(0)-1| == 0).
            x = jnp.pad(x, (0, LANES - rem))
        return x.reshape(-1, LANES)

    m2 = _to_2d(mask)
    o2 = _to_2d(output)
    g2 = _to_2d(gt)
    rows = m2.shape[0]

    # Row tile: multiple of 8 sublanes, no larger than needed for small inputs.
    rt = min(int(row_tile), ((rows + 7) // 8) * 8)
    num_tiles = pl.cdiv(rows, rt)
    needs_mask = (rows % rt) != 0

    kernel = functools.partial(_loss_kernel, rows=rows, row_tile=rt,
                               needs_mask=needs_mask)

    in_spec = pl.BlockSpec((rt, LANES), lambda i: (i, 0))
    out_spec = pl.BlockSpec((1, 8, LANES), lambda i: (i, 0, 0))
    part_shape = jax.ShapeDtypeStruct((num_tiles, 8, LANES), jnp.float32)

    in_bytes = sum(int(jnp.asarray(a).dtype.itemsize) * n_elems
                   for a in (mask, output, gt))
    out_bytes = 3 * num_tiles * 8 * LANES * 4
    cost = pl.CostEstimate(flops=8 * n_elems,
                           transcendentals=n_elems,
                           bytes_accessed=in_bytes + out_bytes)

    hole_p, valid_p, rel_p = pl.pallas_call(
        kernel,
        out_shape=(part_shape, part_shape, part_shape),
        grid_spec=pltpu.PrefetchScalarGridSpec(
            num_scalar_prefetch=0,
            grid=(num_tiles,),
            in_specs=[in_spec, in_spec, in_spec],
            out_specs=[out_spec, out_spec, out_spec],
        ),
        compiler_params=pltpu.CompilerParams(
            dimension_semantics=("parallel",)),  # per-tile partials -> megacore OK
        cost_estimate=cost,
    )(m2, o2, g2)

    inv_n = 1.0 / float(n_elems)
    return {
        'l1_loss_hole': jnp.sum(hole_p) * inv_n,
        'l1_loss_valid': jnp.sum(valid_p) * inv_n,
        'relative_loss': jnp.sum(rel_p) * inv_n,
    }


def _reference(mask, output, gt):
    mask = jnp.asarray(mask, jnp.float32)
    output = jnp.asarray(output, jnp.float32)
    gt = jnp.asarray(gt, jnp.float32)
    l1_hole = jnp.mean(jnp.abs((1 - mask) * output - (1 - mask) * gt))
    l1_valid = jnp.mean(jnp.abs(mask * output - mask * gt))
    rel = jnp.mean(jnp.abs(jnp.exp(output) - jnp.exp(gt)) / jnp.exp(gt))
    return l1_hole, l1_valid, rel


if __name__ == "__main__":
    key = jax.random.PRNGKey(0)
    k1, k2, k3 = jax.random.split(key, 3)

    B, C, H, W = 2, 4, 16, 16  # NCHW, same convention as the PyTorch module
    mask = (jax.random.uniform(k1, (B, C, H, W)) > 0.5).astype(jnp.float32)
    output = jax.random.normal(k2, (B, C, H, W), dtype=jnp.float32) * 0.5
    gt = jax.random.normal(k3, (B, C, H, W), dtype=jnp.float32) * 0.5

    res = inpainting_loss(mask, output, gt)
    res = jax.tree_util.tree_map(jax.block_until_ready, res)

    ref_hole, ref_valid, ref_rel = _reference(mask, output, gt)
    assert jnp.allclose(res['l1_loss_hole'], ref_hole, rtol=1e-5, atol=1e-6)
    assert jnp.allclose(res['l1_loss_valid'], ref_valid, rtol=1e-5, atol=1e-6)
    assert jnp.allclose(res['relative_loss'], ref_rel, rtol=1e-5, atol=1e-6)

    print("KERNEL_OK")
</pallas_src>

<mosaic_0001>
module attributes {stable_mosaic.version = 11 : i64} {
  func.func @_loss_kernel(%arg0: i32, %arg1: memref<16x128xf32, #tpu.memory_space<vmem>>, %arg2: memref<16x128xf32, #tpu.memory_space<vmem>>, %arg3: memref<16x128xf32, #tpu.memory_space<vmem>>, %arg4: memref<1x8x128xf32, #tpu.memory_space<vmem>>, %arg5: memref<1x8x128xf32, #tpu.memory_space<vmem>>, %arg6: memref<1x8x128xf32, #tpu.memory_space<vmem>>) attributes {dimension_semantics = [#tpu.dimension_semantics<parallel>], iteration_bounds = array<i64: 1>, scalar_prefetch = 0 : i64, scratch_operands = 0 : i64, tpu.core_type = #tpu.core_type<tc>, window_params = [{transform_indices = @transform_0, window_bounds = array<i64: 16, 128>}, {transform_indices = @transform_1, window_bounds = array<i64: 16, 128>}, {transform_indices = @transform_2, window_bounds = array<i64: 16, 128>}, {transform_indices = @transform_3, window_bounds = array<i64: 1, 8, 128>}, {transform_indices = @transform_4, window_bounds = array<i64: 1, 8, 128>}, {transform_indices = @transform_5, window_bounds = array<i64: 1, 8, 128>}]} {
    %c0 = arith.constant 0 : index
    %c0_0 = arith.constant 0 : index
    %0 = vector.load %arg1[%c0, %c0_0] : memref<16x128xf32, #tpu.memory_space<vmem>>, vector<16x128xf32>
    %c0_1 = arith.constant 0 : index
    %c0_2 = arith.constant 0 : index
    %1 = vector.load %arg2[%c0_1, %c0_2] : memref<16x128xf32, #tpu.memory_space<vmem>>, vector<16x128xf32>
    %c0_3 = arith.constant 0 : index
    %c0_4 = arith.constant 0 : index
    %2 = vector.load %arg3[%c0_3, %c0_4] : memref<16x128xf32, #tpu.memory_space<vmem>>, vector<16x128xf32>
    %3 = arith.subf %1, %2 : vector<16x128xf32>
    %cst = arith.constant 1.000000e+00 : f32
    %4 = vector.broadcast %cst : f32 to vector<16x128xf32>
    %5 = arith.subf %4, %0 : vector<16x128xf32>
    %6 = arith.mulf %5, %3 : vector<16x128xf32>
    %7 = math.absf %6 : vector<16x128xf32>
    %8 = arith.mulf %0, %3 : vector<16x128xf32>
    %9 = math.absf %8 : vector<16x128xf32>
    %10 = math.exp %3 : vector<16x128xf32>
    %cst_5 = arith.constant 1.000000e+00 : f32
    %11 = vector.broadcast %cst_5 : f32 to vector<16x128xf32>
    %12 = arith.subf %10, %11 : vector<16x128xf32>
    %13 = math.absf %12 : vector<16x128xf32>
    %14 = vector.shape_cast %7 : vector<16x128xf32> to vector<2x8x128xf32>
    %cst_6 = arith.constant dense<0.000000e+00> : vector<8x128xf32>
    %15 = vector.multi_reduction <add>, %14, %cst_6 [0] : vector<2x8x128xf32> to vector<8x128xf32>
    %c0_7 = arith.constant 0 : index
    %c0_8 = arith.constant 0 : index
    %c0_9 = arith.constant 0 : index
    %16 = vector.load %arg4[%c0_7, %c0_8, %c0_9] : memref<1x8x128xf32, #tpu.memory_space<vmem>>, vector<1x8x128xf32>
    %17 = vector.shape_cast %16 : vector<1x8x128xf32> to vector<8x128xf32>
    %18 = vector.shape_cast %15 : vector<8x128xf32> to vector<1x8x128xf32>
    tpu.vector_store %arg4[%c0_7, %c0_8, %c0_9], %18 {strides = array<i32>} : memref<1x8x128xf32, #tpu.memory_space<vmem>>, vector<1x8x128xf32>,
    %19 = vector.shape_cast %9 : vector<16x128xf32> to vector<2x8x128xf32>
    %cst_10 = arith.constant dense<0.000000e+00> : vector<8x128xf32>
    %20 = vector.multi_reduction <add>, %19, %cst_10 [0] : vector<2x8x128xf32> to vector<8x128xf32>
    %c0_11 = arith.constant 0 : index
    %c0_12 = arith.constant 0 : index
    %c0_13 = arith.constant 0 : index
    %21 = vector.load %arg5[%c0_11, %c0_12, %c0_13] : memref<1x8x128xf32, #tpu.memory_space<vmem>>, vector<1x8x128xf32>
    %22 = vector.shape_cast %21 : vector<1x8x128xf32> to vector<8x128xf32>
    %23 = vector.shape_cast %20 : vector<8x128xf32> to vector<1x8x128xf32>
    tpu.vector_store %arg5[%c0_11, %c0_12, %c0_13], %23 {strides = array<i32>} : memref<1x8x128xf32, #tpu.memory_space<vmem>>, vector<1x8x128xf32>,
    %24 = vector.shape_cast %13 : vector<16x128xf32> to vector<2x8x128xf32>
    %cst_14 = arith.constant dense<0.000000e+00> : vector<8x128xf32>
    %25 = vector.multi_reduction <add>, %24, %cst_14 [0] : vector<2x8x128xf32> to vector<8x128xf32>
    %c0_15 = arith.constant 0 : index
    %c0_16 = arith.constant 0 : index
    %c0_17 = arith.constant 0 : index
    %26 = vector.load %arg6[%c0_15, %c0_16, %c0_17] : memref<1x8x128xf32, #tpu.memory_space<vmem>>, vector<1x8x128xf32>
    %27 = vector.shape_cast %26 : vector<1x8x128xf32> to vector<8x128xf32>
    %28 = vector.shape_cast %25 : vector<8x128xf32> to vector<1x8x128xf32>
    tpu.vector_store %arg6[%c0_15, %c0_16, %c0_17], %28 {strides = array<i32>} : memref<1x8x128xf32, #tpu.memory_space<vmem>>, vector<1x8x128xf32>,
    return
  }
  func.func @transform_0(%arg0: i32) -> (i32, i32) {
    %c0_i32 = arith.constant 0 : i32
    %c0_i32_0 = arith.constant 0 : i32
    return %arg0, %c0_i32 : i32, i32
  }
  func.func @transform_1(%arg0: i32) -> (i32, i32) {
    %c0_i32 = arith.constant 0 : i32
    %c0_i32_0 = arith.constant 0 : i32
    return %arg0, %c0_i32 : i32, i32
  }
  func.func @transform_2(%arg0: i32) -> (i32, i32) {
    %c0_i32 = arith.constant 0 : i32
    %c0_i32_0 = arith.constant 0 : i32
    return %arg0, %c0_i32 : i32, i32
  }
  func.func @transform_3(%arg0: i32) -> (i32, i32, i32) {
    %c0_i32 = arith.constant 0 : i32
    %c0_i32_0 = arith.constant 0 : i32
    %c0_i32_1 = arith.constant 0 : i32
    return %arg0, %c0_i32, %c0_i32_0 : i32, i32, i32
  }
  func.func @transform_4(%arg0: i32) -> (i32, i32, i32) {
    %c0_i32 = arith.constant 0 : i32
    %c0_i32_0 = arith.constant 0 : i32
    %c0_i32_1 = arith.constant 0 : i32
    return %arg0, %c0_i32, %c0_i32_0 : i32, i32, i32
  }
  func.func @transform_5(%arg0: i32) -> (i32, i32, i32) {
    %c0_i32 = arith.constant 0 : i32
    %c0_i32_0 = arith.constant 0 : i32
    %c0_i32_1 = arith.constant 0 : i32
    return %arg0, %c0_i32, %c0_i32_0 : i32, i32, i32
  }
}

</mosaic_0001>

<bundles_post_ra>
// kernel: tpu_custom_call.1
= control target key start
LH: loop header
LB: loop body
LE: loop exit
PB: predicated region body
PF: predicated region fallthrough
CT: control target
= control target key end

     0   :  { %11 = vsyncpa [#allocation3], 0  ;;  %s369_s0 = inlined_call_operand.hbm [shape: f32[16,128], index: 0, kind: input, shape index: {}]   ;;  %s370_s1 = inlined_call_operand.hbm [shape: f32[16,128], index: 1, kind: input, shape index: {}]   ;;  %s371_s2 = inlined_call_operand.hbm [shape: f32[16,128], index: 2, kind: input, shape index: {}]   ;;  %s372_s3 = inlined_call_operand.hbm [shape: f32[1,8,128], index: 3, kind: output, shape index: {0}]   ;;  %s373_s4 = inlined_call_operand.hbm [shape: f32[1,8,128], index: 4, kind: output, shape index: {1}]   ;;  %s374_s5 = inlined_call_operand.hbm [shape: f32[1,8,128], index: 5, kind: output, shape index: {2}]  }
   0x1   :  { %12 = vsyncpa [#allocation6], 0 }
   0x2   :  { %13 = vsyncpa [#allocation4], 0 }
   0x3   :  { %14 = vsyncpa [#allocation10], 0  ;;  %s32_s20 = sshll.u32 %s370_s1, 4  ;;  %s313_s21 = smov [#allocation5]   ;;  %s33_s20 = int_to_ptr.hbm [resolvable:$true] %s32_s20 }
   0x4   :  { %s34_s22 = sshll.u32 %s313_s21, 4  ;;  %s19_s25 = sshll.u32 %s369_s0, 4  ;;  %s35_s22 = int_to_ptr.vmem [resolvable:$true] %s34_s22  ;;  %s20_s25 = int_to_ptr.hbm [resolvable:$true] %s19_s25 }
   0x5   :  { %s314_s26 = smov 128   ;;  %s315_s27 = smov 8  }
   0x6   :  { %40 = dma.hbm_to_vmem [thread:$0]  %s33_s20, 256, %s35_s22, [#allocation6], %s314_s26, %s314_s26, %s315_s27  }
   0x7   :  { %s316_s28 = smov [#allocation2]   ;;  %s45_s7 = sshll.u32 %s371_s2, 4  ;;  %s46_s7 = int_to_ptr.hbm [resolvable:$true] %s45_s7 }
   0x8   :  { %s21_s29 = sshll.u32 %s316_s28, 4  ;;  %s317_s1 = smov [#allocation7]   ;;  %s22_s29 = int_to_ptr.vmem [resolvable:$true] %s21_s29 }
   0x9   :  { %27 = dma.hbm_to_vmem [thread:$0]  %s20_s25, 256, %s22_s29, [#allocation3], %s314_s26, %s314_s26, %s315_s27  }
   0xa   :  { %s47_s8 = sshll.u32 %s317_s1, 4  ;;  %s48_s8 = int_to_ptr.vmem [resolvable:$true] %s47_s8 }
   0xb   :  { %53 = dma.hbm_to_vmem [thread:$0]  %s46_s7, 256, %s48_s8, [#allocation6], %s314_s26, %s314_s26, %s315_s27  }
   0xc   :  { %305 = dma.done.wait [#allocation3], 256  }
   0xd   :  { %306 = vsyncadd [#allocation3], 4294967040 }
   0xe   :  { %307 = dma.done.wait [#allocation6], 512  }
   0xf   :  { %308 = vsyncadd [#allocation6], 4294966784  ;;  %v66_v0 = vld [vmem:[#allocation2] sm:$0xff]  ;;  %v67_v1 = vld [vmem:[#allocation2 + $0x8] sm:$0xff]  ;;  %s318_s0 = smov [#allocation9]   ;;  %s116_s11 = sshll.u32 %s373_s4, 4  ;;  %s117_s11 = int_to_ptr.hbm [resolvable:$true] %s116_s11 }
  0x10   :  { %v68_v2 = vld [vmem:[#allocation5] sm:$0xff]  ;;  %v69_v3 = vld [vmem:[#allocation5 + $0x8] sm:$0xff]  ;;  %v70_v4 = vld [vmem:[#allocation7] sm:$0xff]  ;;  %v74_v6 = vsub.f32 1.0, %v66_v0  ;;  %v75_v7 = vsub.f32 1.0, %v67_v1  ;;  %s114_s2 = sshll.u32 %s318_s0, 4  ;;  %s115_s2 = int_to_ptr.vmem [resolvable:$true] %s114_s2 }
  0x11   :  { %v71_v5 = vld [vmem:[#allocation7 + $0x8] sm:$0xff]  ;;  %v72_v8 = vsub.f32 %v68_v2, %v70_v4  ;;  %s319_s12 = smov [#allocation8]   ;;  %s105_s16 = sshll.u32 %s372_s3, 4  ;;  %s106_s16 = int_to_ptr.hbm [resolvable:$true] %s105_s16 }
  0x12   :  { %v73_v9 = vsub.f32 %v69_v3, %v71_v5  ;;  %s103_s13 = sshll.u32 %s319_s12, 4  ;;  %s320_s3 = smov [#allocation11]   ;;  %s104_s13 = int_to_ptr.vmem [resolvable:$true] %s103_s13 }
  0x13   :  { %v80_v10 = vmul.f32 %v72_v8, %v66_v0  ;;  %v76_v12 = vmul.f32 %v74_v6, %v72_v8  ;;  %v84_v14 = vmul.f32 1.442695, %v72_v8  ;;  %s125_s4 = sshll.u32 %s320_s3, 4  ;;  %s127_s19 = sshll.u32 %s374_s5, 4  ;;  %s126_s4 = int_to_ptr.vmem [resolvable:$true] %s125_s4  ;;  %s128_s19 = int_to_ptr.hbm [resolvable:$true] %s127_s19 }
  0x14   :  { %v81_v11 = vmul.f32 %v73_v9, %v67_v1  ;;  %v77_v13 = vmul.f32 %v75_v7, %v73_v9  ;;  %v86_v15 = vmul.f32 1.442695, %v73_v9 }
  0x15   :  { %v82_v16 = vand.u32 2147483647, %v80_v10  ;;  %v78_v18 = vand.u32 2147483647, %v76_v12  ;;  %157 = vpow2.f32 %v84_v14 }
  0x16   :  { %v83_v17 = vand.u32 2147483647, %v81_v11  ;;  %v79_v19 = vand.u32 2147483647, %v77_v13  ;;  %159 = vpow2.f32 %v86_v15 }
  0x18   :  { %v94_v20 = vadd.f32 %v83_v17, %v82_v16  ;;  %v92_v21 = vadd.f32 %v79_v19, %v78_v18 }
  0x1a   :  { %95 = vst [vmem:[#allocation9] sm:$0xff] %v94_v20 }
  0x1b   :  { %93 = vst [vmem:[#allocation8] sm:$0xff] %v92_v21  ;;  %119 = dma.vmem_to_hbm [thread:$0]  %s115_s2, 128, %s117_s11, [#allocation10]   ;;  %v158_v22 = vpop.eup %157 }
  0x1c   :  { %108 = dma.vmem_to_hbm [thread:$0]  %s104_s13, 128, %s106_s16, [#allocation4]   ;;  %v160_v23 = vpop.eup %159  ;;  %v147_v24 = vadd.f32 -1.0, %v158_v22 }
  0x1d   :  { %v148_v25 = vadd.f32 -1.0, %v160_v23 }
  0x1e   :  { %v90_v26 = vand.u32 2147483647, %v147_v24 }
  0x1f   :  { %v91_v27 = vand.u32 2147483647, %v148_v25 }
  0x21   :  { %v96_v28 = vadd.f32 %v91_v27, %v90_v26 }
  0x23   :  { %97 = vst [vmem:[#allocation11] sm:$0xff] %v96_v28 }
  0x24   :  { %130 = dma.vmem_to_hbm [thread:$0]  %s126_s4, 128, %s128_s19, [#allocation10]  }
  0x25   :  { %309 = dma.done.wait [#allocation4], 128  }
  0x26   :  { %310 = vsyncadd [#allocation4], 4294967168 }
  0x27   :  { %311 = dma.done.wait [#allocation10], 256  }
  0x28   :  { %312 = vsyncadd [#allocation10], 4294967040 }
  0x29   :  { %143 = vsyncpa [#allocation3], 1 }
  0x2a   :  { %144 = vsyncpa [#allocation6], 1 }
  0x2b   :  { %145 = vsyncpa [#allocation4], 1 }
  0x2c   :  { %146 = vsyncpa [#allocation10], 1 }

</bundles_post_ra>
